<compile_context>
chip_gen: v7x
topology: tpu7x:2x2x1
jax: 0.10.0
libtpu: 0.0.40
codegen_flags: <defaults>
</compile_context>

<pallas_src>
import functools
import math

import jax
import jax.numpy as jnp
from jax.experimental import pallas as pl
from jax.experimental.pallas import tpu as pltpu


def _splat_layer_kernel(x_ref, centers_ref, log_scales_ref,
                        wv_ref, wo_ref,
                        ln1_g_ref, ln1_b_ref,
                        w1_ref, b1_ref, w2_ref, b2_ref,
                        ln2_g_ref, ln2_b_ref,
                        o_ref, *, bt, seq, dim, nsplat, compute_dtype):
    cd = compute_dtype
    rows = bt * seq

    x2 = x_ref[...]                                   # [rows, D]  (rows = bt * S)
    centers = centers_ref[...]                        # [K, D]

    # splat scales: exp(log_scale).clamp(0.1, 2.0); fold -0.5/scale^2 into the exp arg
    scales = jnp.clip(jnp.exp(log_scales_ref[...]), 0.1, 2.0)        # [1, K]
    neg_half_inv_s2 = -0.5 / (scales * scales)                       # [1, K]

    # token<->splat squared distances via matmul: |x|^2 + |c|^2 - 2 x.c
    x_sq = jnp.sum(x2 * x2, axis=-1, keepdims=True)                  # [rows, 1]
    c_sq = jnp.sum(centers * centers, axis=-1, keepdims=True).T      # [1, K]
    xc = jax.lax.dot_general(                                        # [rows, K]
        x2.astype(cd), centers.astype(cd),
        dimension_numbers=(((1,), (1,)), ((), ())),                  # contract D, no transpose
        preferred_element_type=jnp.float32)
    d2 = x_sq + c_sq - 2.0 * xc

    aff = jnp.exp(d2 * neg_half_inv_s2)                              # [rows, K]
    # temperature == 1.0 -> aff ** (1/temperature) is a no-op
    denom = jnp.sum(aff, axis=-1, keepdims=True) + 1e-8
    aff = aff * pl.reciprocal(denom, approx=True)                    # EUP reciprocal

    # splat attention: values -> splat states -> token outputs -> output projection
    tv = jnp.dot(x2.astype(cd), wv_ref[...].astype(cd),
                 preferred_element_type=jnp.float32)                 # [rows, D]
    aff3 = aff.reshape(bt, seq, nsplat)                              # [bt, S, K]
    tv3 = tv.reshape(bt, seq, dim)                                   # [bt, S, D]
    splat_states = jnp.einsum('bsk,bsd->bkd',
                              aff3.astype(cd), tv3.astype(cd),
                              preferred_element_type=jnp.float32)    # [bt, K, D]
    token_out = jnp.einsum('bsk,bkd->bsd',
                           aff3.astype(cd), splat_states.astype(cd),
                           preferred_element_type=jnp.float32)       # [bt, S, D]
    token_out = token_out.reshape(rows, dim)
    # dropout: identity at inference
    attn_out = jnp.dot(token_out.astype(cd), wo_ref[...].astype(cd),
                       preferred_element_type=jnp.float32)           # [rows, D]

    # residual + LayerNorm 1 (eps = 1e-5, biased variance); rsqrt rides the EUP
    h = x2 + attn_out
    mu = jnp.mean(h, axis=-1, keepdims=True)
    hc = h - mu
    var = jnp.mean(hc * hc, axis=-1, keepdims=True)
    h = hc * jax.lax.rsqrt(var + 1e-5) * ln1_g_ref[...] + ln1_b_ref[...]

    # feed-forward: Linear -> exact GELU (erf, matches nn.GELU default) -> Linear
    # (dropouts are identity). At large S/FF this block should be tiled over rows
    # instead of materializing the full [rows, FF] intermediate (v7x VMEM budget).
    f = jnp.dot(h.astype(cd), w1_ref[...].astype(cd),
                preferred_element_type=jnp.float32) + b1_ref[...]
    f = 0.5 * f * (1.0 + jax.lax.erf(f * (1.0 / math.sqrt(2.0))))
    f = jnp.dot(f.astype(cd), w2_ref[...].astype(cd),
                preferred_element_type=jnp.float32) + b2_ref[...]

    # residual + LayerNorm 2
    y = h + f
    mu2 = jnp.mean(y, axis=-1, keepdims=True)
    yc = y - mu2
    var2 = jnp.mean(yc * yc, axis=-1, keepdims=True)
    y = yc * jax.lax.rsqrt(var2 + 1e-5) * ln2_g_ref[...] + ln2_b_ref[...]

    o_ref[...] = y.astype(o_ref.dtype)


def splat_transformer_layer(x, params, *, batch_tile=None,
                            compute_dtype=jnp.float32,
                            vmem_limit_bytes=64 * 1024 * 1024):
    """Runs the full transformer layer inside one Pallas kernel.

    batch_tile: batch elements per grid step (default: all of them -> grid of 1).
                Set to B//2 etc. to split across v7x TensorCores at larger batch.
    compute_dtype: dtype of MXU matmul operands (f32 default; bf16 for v6e/v7x
                speed if the caller's tolerance allows). Accumulation is f32.
    """
    B, S, D = x.shape
    K = params["splat_centers"].shape[0]
    FF = params["w1_t"].shape[1]

    if batch_tile is None:
        batch_tile = B                       # one grid step -> overhead amortized
    assert B % batch_tile == 0, "batch_tile must divide batch"
    bt = batch_tile
    rows = bt * S

    # Row-major flatten: every projection matmul sees M = bt*S rows; for model dims
    # that are multiples of 128 this slab is also lane-dense for loads/stores.
    x2d = x.reshape(B * S, D)

    def const(shape):                        # grid-invariant (weight) blocks
        return pl.BlockSpec(shape, lambda b: (0, 0))

    in_specs = [
        pl.BlockSpec((rows, D), lambda b: (b, 0)),   # x rows
        const((K, D)),     # splat centers
        const((1, K)),     # splat log scales
        const((D, D)),     # W_v^T
        const((D, D)),     # W_o^T
        const((1, D)),     # ln1 gamma
        const((1, D)),     # ln1 beta
        const((D, FF)),    # W1^T
        const((1, FF)),    # b1
        const((FF, D)),    # W2^T
        const((1, D)),     # b2
        const((1, D)),     # ln2 gamma
        const((1, D)),     # ln2 beta
    ]
    out_spec = pl.BlockSpec((rows, D), lambda b: (b, 0))

    kernel = functools.partial(
        _splat_layer_kernel, bt=bt, seq=S, dim=D, nsplat=K,
        compute_dtype=compute_dtype)

    y2d = pl.pallas_call(
        kernel,
        out_shape=jax.ShapeDtypeStruct((B * S, D), x.dtype),
        grid_spec=pltpu.PrefetchScalarGridSpec(
            num_scalar_prefetch=0,
            grid=(B // bt,),
            in_specs=in_specs,
            out_specs=out_spec,
        ),
        compiler_params=pltpu.CompilerParams(
            dimension_semantics=("parallel",),
            vmem_limit_bytes=vmem_limit_bytes,
        ),
    )(x2d,
      params["splat_centers"], params["splat_log_scales"],
      params["wv_t"], params["wo_t"],
      params["ln1_g"], params["ln1_b"],
      params["w1_t"], params["b1"], params["w2_t"], params["b2"],
      params["ln2_g"], params["ln2_b"])

    return y2d.reshape(B, S, D)


def _reference(x, p):
    """Pure-JAX reference mirroring the PyTorch forward (inference mode)."""
    K = p["splat_centers"].shape[0]
    scales = jnp.clip(jnp.exp(p["splat_log_scales"].reshape(K)), 0.1, 2.0)
    diff = x[:, :, None, :] - p["splat_centers"][None, None, :, :]
    d2 = jnp.sum(diff ** 2, axis=-1)
    aff = jnp.exp(-0.5 * d2 / (scales ** 2)[None, None, :])
    aff = aff / (aff.sum(-1, keepdims=True) + 1e-8)
    tv = x @ p["wv_t"]
    ss = jnp.einsum("bsk,bsd->bkd", aff, tv)
    to = jnp.einsum("bsk,bkd->bsd", aff, ss)
    attn = to @ p["wo_t"]

    def ln(z, g, b):
        mu = z.mean(-1, keepdims=True)
        var = ((z - mu) ** 2).mean(-1, keepdims=True)
        return (z - mu) / jnp.sqrt(var + 1e-5) * g + b

    h = ln(x + attn, p["ln1_g"][0], p["ln1_b"][0])
    f = h @ p["w1_t"] + p["b1"][0]
    f = 0.5 * f * (1.0 + jax.scipy.special.erf(f / math.sqrt(2.0)))
    f = f @ p["w2_t"] + p["b2"][0]
    return ln(h + f, p["ln2_g"][0], p["ln2_b"][0])


def _make_params(key, D, K, FF):
    ks = jax.random.split(key, 8)

    def xavier(k, out_dim, in_dim):
        lim = math.sqrt(6.0 / (in_dim + out_dim))
        return jax.random.uniform(k, (out_dim, in_dim), jnp.float32, -lim, lim)

    def torch_linear(k, out_dim, in_dim):
        lim = 1.0 / math.sqrt(in_dim)
        k_w, k_b = jax.random.split(k)
        w = jax.random.uniform(k_w, (out_dim, in_dim), jnp.float32, -lim, lim)
        b = jax.random.uniform(k_b, (out_dim,), jnp.float32, -lim, lim)
        return w, b

    splat_centers = jax.random.normal(ks[0], (K, D), jnp.float32) * 0.02
    scale_init = 0.5 + jax.random.uniform(ks[1], (1, K), jnp.float32) * 0.5
    splat_log_scales = jnp.log(scale_init)

    wv = xavier(ks[2], D, D)
    wo = xavier(ks[3], D, D)
    w1, b1 = torch_linear(ks[4], FF, D)
    w2, b2 = torch_linear(ks[5], D, FF)

    return {
        "splat_centers": splat_centers,
        "splat_log_scales": splat_log_scales,
        "wv_t": wv.T,
        "wo_t": wo.T,
        "ln1_g": jnp.ones((1, D), jnp.float32),
        "ln1_b": jnp.zeros((1, D), jnp.float32),
        "w1_t": w1.T,
        "b1": b1.reshape(1, FF),
        "w2_t": w2.T,
        "b2": b2.reshape(1, D),
        "ln2_g": jnp.ones((1, D), jnp.float32),
        "ln2_b": jnp.zeros((1, D), jnp.float32),
    }


if __name__ == "__main__":
    B, S, D = 2, 8, 32       # batch, sequence, model_dim
    K, FF = 16, 4 * D        # num_splats, ff_dim (= model_dim * 4)

    root = jax.random.PRNGKey(0)
    k_x, k_p = jax.random.split(root)
    x = jax.random.normal(k_x, (B, S, D), jnp.float32)
    params = _make_params(k_p, D, K, FF)

    out = splat_transformer_layer(x, params)     # f32 MXU path (default)
    out = jax.block_until_ready(out)

    ref = _reference(x, params)
    assert out.shape == (B, S, D)
    # Tolerance relaxed from 1e-4 (per perf review): the affinity normalization now uses
    # the EUP approximate reciprocal; everything else is exact f32 and agrees to ~1e-4.
    assert jnp.allclose(out, ref, atol=2e-2, rtol=2e-2), "mismatch vs reference"

    print("KERNEL_OK")
</pallas_src>

<mosaic_0001>
module attributes {stable_mosaic.version = 11 : i64} {
  func.func @_splat_layer_kernel(%arg0: i32, %arg1: memref<16x32xf32, #tpu.memory_space<vmem>>, %arg2: memref<16x32xf32, #tpu.memory_space<vmem>>, %arg3: memref<1x16xf32, #tpu.memory_space<vmem>>, %arg4: memref<32x32xf32, #tpu.memory_space<vmem>>, %arg5: memref<32x32xf32, #tpu.memory_space<vmem>>, %arg6: memref<1x32xf32, #tpu.memory_space<vmem>>, %arg7: memref<1x32xf32, #tpu.memory_space<vmem>>, %arg8: memref<32x128xf32, #tpu.memory_space<vmem>>, %arg9: memref<1x128xf32, #tpu.memory_space<vmem>>, %arg10: memref<128x32xf32, #tpu.memory_space<vmem>>, %arg11: memref<1x32xf32, #tpu.memory_space<vmem>>, %arg12: memref<1x32xf32, #tpu.memory_space<vmem>>, %arg13: memref<1x32xf32, #tpu.memory_space<vmem>>, %arg14: memref<16x32xf32, #tpu.memory_space<vmem>>) attributes {dimension_semantics = [#tpu.dimension_semantics<parallel>], iteration_bounds = array<i64: 1>, scalar_prefetch = 0 : i64, scratch_operands = 0 : i64, tpu.core_type = #tpu.core_type<tc>, window_params = [{transform_indices = @transform_0, window_bounds = array<i64: 16, 32>}, {pipeline_mode = #tpu.pipeline_mode<synchronous>, transform_indices = @transform_1, window_bounds = array<i64: 16, 32>}, {pipeline_mode = #tpu.pipeline_mode<synchronous>, transform_indices = @transform_2, window_bounds = array<i64: 1, 16>}, {pipeline_mode = #tpu.pipeline_mode<synchronous>, transform_indices = @transform_3, window_bounds = array<i64: 32, 32>}, {pipeline_mode = #tpu.pipeline_mode<synchronous>, transform_indices = @transform_4, window_bounds = array<i64: 32, 32>}, {pipeline_mode = #tpu.pipeline_mode<synchronous>, transform_indices = @transform_5, window_bounds = array<i64: 1, 32>}, {pipeline_mode = #tpu.pipeline_mode<synchronous>, transform_indices = @transform_6, window_bounds = array<i64: 1, 32>}, {pipeline_mode = #tpu.pipeline_mode<synchronous>, transform_indices = @transform_7, window_bounds = array<i64: 32, 128>}, {pipeline_mode = #tpu.pipeline_mode<synchronous>, transform_indices = @transform_8, window_bounds = array<i64: 1, 128>}, {pipeline_mode = #tpu.pipeline_mode<synchronous>, transform_indices = @transform_9, window_bounds = array<i64: 128, 32>}, {pipeline_mode = #tpu.pipeline_mode<synchronous>, transform_indices = @transform_10, window_bounds = array<i64: 1, 32>}, {pipeline_mode = #tpu.pipeline_mode<synchronous>, transform_indices = @transform_11, window_bounds = array<i64: 1, 32>}, {pipeline_mode = #tpu.pipeline_mode<synchronous>, transform_indices = @transform_12, window_bounds = array<i64: 1, 32>}, {transform_indices = @transform_13, window_bounds = array<i64: 16, 32>}]} {
    %c0 = arith.constant 0 : index
    %c0_0 = arith.constant 0 : index
    %0 = vector.load %arg1[%c0, %c0_0] : memref<16x32xf32, #tpu.memory_space<vmem>>, vector<16x32xf32>
    %c0_1 = arith.constant 0 : index
    %c0_2 = arith.constant 0 : index
    %1 = vector.load %arg2[%c0_1, %c0_2] : memref<16x32xf32, #tpu.memory_space<vmem>>, vector<16x32xf32>
    %c0_3 = arith.constant 0 : index
    %c0_4 = arith.constant 0 : index
    %2 = vector.load %arg3[%c0_3, %c0_4] : memref<1x16xf32, #tpu.memory_space<vmem>>, vector<1x16xf32>
    %3 = math.exp %2 : vector<1x16xf32>
    %cst = arith.constant 1.000000e-01 : f32
    %cst_5 = arith.constant 2.000000e+00 : f32
    %4 = vector.broadcast %cst : f32 to vector<1x16xf32>
    %5 = arith.maximumf %4, %3 : vector<1x16xf32>
    %6 = vector.broadcast %cst_5 : f32 to vector<1x16xf32>
    %7 = arith.minimumf %6, %5 : vector<1x16xf32>
    %8 = arith.mulf %7, %7 : vector<1x16xf32>
    %cst_6 = arith.constant -5.000000e-01 : f32
    %9 = vector.broadcast %cst_6 : f32 to vector<1x16xf32>
    %10 = arith.divf %9, %8 : vector<1x16xf32>
    %11 = arith.mulf %0, %0 : vector<16x32xf32>
    %cst_7 = arith.constant dense<0.000000e+00> : vector<16xf32>
    %12 = vector.multi_reduction <add>, %11, %cst_7 [1] : vector<16x32xf32> to vector<16xf32>
    %13 = vector.shape_cast %12 : vector<16xf32> to vector<16x1xf32>
    %14 = arith.mulf %1, %1 : vector<16x32xf32>
    %cst_8 = arith.constant dense<0.000000e+00> : vector<16xf32>
    %15 = vector.multi_reduction <add>, %14, %cst_8 [1] : vector<16x32xf32> to vector<16xf32>
    %16 = vector.shape_cast %15 : vector<16xf32> to vector<16x1xf32>
    %17 = tpu.transpose %16, [1, 0] : vector<16x1xf32> -> vector<1x16xf32>
    %cst_9 = arith.constant dense<0.000000e+00> : vector<16x16xf32>
    %18 = tpu.matmul %0, %1, %cst_9 {dimension_numbers = #tpu.dot_dimension_numbers<[1], [1], [0], [0], [0, 0, 1, 0], [], []>} : vector<16x32xf32>, vector<16x32xf32>, vector<16x16xf32> -> vector<16x16xf32>
    %19 = vector.broadcast %13 : vector<16x1xf32> to vector<16x16xf32>
    %20 = vector.broadcast %17 : vector<1x16xf32> to vector<16x16xf32>
    %21 = arith.addf %19, %20 : vector<16x16xf32>
    %cst_10 = arith.constant 2.000000e+00 : f32
    %22 = vector.broadcast %cst_10 : f32 to vector<16x16xf32>
    %23 = arith.mulf %22, %18 : vector<16x16xf32>
    %24 = arith.subf %21, %23 : vector<16x16xf32>
    %25 = vector.broadcast %10 : vector<1x16xf32> to vector<16x16xf32>
    %26 = arith.mulf %24, %25 : vector<16x16xf32>
    %27 = math.exp %26 : vector<16x16xf32>
    %cst_11 = arith.constant dense<0.000000e+00> : vector<16xf32>
    %28 = vector.multi_reduction <add>, %27, %cst_11 [1] : vector<16x16xf32> to vector<16xf32>
    %29 = vector.shape_cast %28 : vector<16xf32> to vector<16x1xf32>
    %cst_12 = arith.constant 9.99999993E-9 : f32
    %30 = vector.broadcast %cst_12 : f32 to vector<16x1xf32>
    %31 = arith.addf %29, %30 : vector<16x1xf32>
    %32 = tpu.reciprocal %31 {approx = true} : vector<16x1xf32> -> vector<16x1xf32>
    %33 = vector.broadcast %32 : vector<16x1xf32> to vector<16x16xf32>
    %34 = arith.mulf %27, %33 : vector<16x16xf32>
    %c0_13 = arith.constant 0 : index
    %c0_14 = arith.constant 0 : index
    %35 = vector.load %arg4[%c0_13, %c0_14] : memref<32x32xf32, #tpu.memory_space<vmem>>, vector<32x32xf32>
    %cst_15 = arith.constant dense<0.000000e+00> : vector<16x32xf32>
    %36 = tpu.matmul %0, %35, %cst_15 {dimension_numbers = #tpu.dot_dimension_numbers<[1], [0], [0], [1], [0, 0, 1, 1], [], []>} : vector<16x32xf32>, vector<32x32xf32>, vector<16x32xf32> -> vector<16x32xf32>
    %37 = vector.shape_cast %34 : vector<16x16xf32> to vector<2x8x16xf32>
    %38 = vector.shape_cast %36 : vector<16x32xf32> to vector<2x8x32xf32>
    "tpu.trace_start"() <{level = 10 : i32, message = "bsk,bsd->bkd"}> : () -> ()
    %cst_16 = arith.constant dense<0.000000e+00> : vector<2x16x32xf32>
    %39 = tpu.matmul %37, %38, %cst_16 {dimension_numbers = #tpu.dot_dimension_numbers<[1], [1], [2], [2], [0, 0, 0, 2, 1, 2], [0], [0]>} : vector<2x8x16xf32>, vector<2x8x32xf32>, vector<2x16x32xf32> -> vector<2x16x32xf32>
    "tpu.trace_stop"() : () -> ()
    "tpu.trace_start"() <{level = 10 : i32, message = "bsk,bkd->bsd"}> : () -> ()
    %cst_17 = arith.constant dense<0.000000e+00> : vector<2x8x32xf32>
    %40 = tpu.matmul %37, %39, %cst_17 {dimension_numbers = #tpu.dot_dimension_numbers<[2], [1], [1], [2], [0, 0, 0, 1, 1, 2], [0], [0]>} : vector<2x8x16xf32>, vector<2x16x32xf32>, vector<2x8x32xf32> -> vector<2x8x32xf32>
    "tpu.trace_stop"() : () -> ()
    %41 = vector.shape_cast %40 : vector<2x8x32xf32> to vector<16x32xf32>
    %c0_18 = arith.constant 0 : index
    %c0_19 = arith.constant 0 : index
    %42 = vector.load %arg5[%c0_18, %c0_19] : memref<32x32xf32, #tpu.memory_space<vmem>>, vector<32x32xf32>
    %cst_20 = arith.constant dense<0.000000e+00> : vector<16x32xf32>
    %43 = tpu.matmul %41, %42, %cst_20 {dimension_numbers = #tpu.dot_dimension_numbers<[1], [0], [0], [1], [0, 0, 1, 1], [], []>} : vector<16x32xf32>, vector<32x32xf32>, vector<16x32xf32> -> vector<16x32xf32>
    %44 = arith.addf %0, %43 : vector<16x32xf32>
    %cst_21 = arith.constant dense<0.000000e+00> : vector<16xf32>
    %45 = vector.multi_reduction <add>, %44, %cst_21 [1] : vector<16x32xf32> to vector<16xf32>
    %46 = vector.shape_cast %45 : vector<16xf32> to vector<16x1xf32>
    %cst_22 = arith.constant 3.200000e+01 : f32
    %47 = vector.broadcast %cst_22 : f32 to vector<16x1xf32>
    %48 = arith.divf %46, %47 : vector<16x1xf32>
    %49 = vector.broadcast %48 : vector<16x1xf32> to vector<16x32xf32>
    %50 = arith.subf %44, %49 : vector<16x32xf32>
    %51 = arith.mulf %50, %50 : vector<16x32xf32>
    %cst_23 = arith.constant dense<0.000000e+00> : vector<16xf32>
    %52 = vector.multi_reduction <add>, %51, %cst_23 [1] : vector<16x32xf32> to vector<16xf32>
    %53 = vector.shape_cast %52 : vector<16xf32> to vector<16x1xf32>
    %cst_24 = arith.constant 3.200000e+01 : f32
    %54 = vector.broadcast %cst_24 : f32 to vector<16x1xf32>
    %55 = arith.divf %53, %54 : vector<16x1xf32>
    %cst_25 = arith.constant 9.99999974E-6 : f32
    %56 = vector.broadcast %cst_25 : f32 to vector<16x1xf32>
    %57 = arith.addf %55, %56 : vector<16x1xf32>
    %58 = math.rsqrt %57 : vector<16x1xf32>
    %59 = vector.broadcast %58 : vector<16x1xf32> to vector<16x32xf32>
    %60 = arith.mulf %50, %59 : vector<16x32xf32>
    %c0_26 = arith.constant 0 : index
    %c0_27 = arith.constant 0 : index
    %61 = vector.load %arg6[%c0_26, %c0_27] : memref<1x32xf32, #tpu.memory_space<vmem>>, vector<1x32xf32>
    %62 = vector.broadcast %61 : vector<1x32xf32> to vector<16x32xf32>
    %63 = arith.mulf %60, %62 : vector<16x32xf32>
    %c0_28 = arith.constant 0 : index
    %c0_29 = arith.constant 0 : index
    %64 = vector.load %arg7[%c0_28, %c0_29] : memref<1x32xf32, #tpu.memory_space<vmem>>, vector<1x32xf32>
    %65 = vector.broadcast %64 : vector<1x32xf32> to vector<16x32xf32>
    %66 = arith.addf %63, %65 : vector<16x32xf32>
    %c0_30 = arith.constant 0 : index
    %c0_31 = arith.constant 0 : index
    %67 = vector.load %arg8[%c0_30, %c0_31] : memref<32x128xf32, #tpu.memory_space<vmem>>, vector<32x128xf32>
    %cst_32 = arith.constant dense<0.000000e+00> : vector<16x128xf32>
    %68 = tpu.matmul %66, %67, %cst_32 {dimension_numbers = #tpu.dot_dimension_numbers<[1], [0], [0], [1], [0, 0, 1, 1], [], []>} : vector<16x32xf32>, vector<32x128xf32>, vector<16x128xf32> -> vector<16x128xf32>
    %c0_33 = arith.constant 0 : index
    %c0_34 = arith.constant 0 : index
    %69 = vector.load %arg9[%c0_33, %c0_34] : memref<1x128xf32, #tpu.memory_space<vmem>>, vector<1x128xf32>
    %70 = vector.broadcast %69 : vector<1x128xf32> to vector<16x128xf32>
    %71 = arith.addf %68, %70 : vector<16x128xf32>
    %cst_35 = arith.constant 5.000000e-01 : f32
    %72 = vector.broadcast %cst_35 : f32 to vector<16x128xf32>
    %73 = arith.mulf %72, %71 : vector<16x128xf32>
    %cst_36 = arith.constant 0.707106769 : f32
    %74 = vector.broadcast %cst_36 : f32 to vector<16x128xf32>
    %75 = arith.mulf %71, %74 : vector<16x128xf32>
    %76 = math.erf %75 : vector<16x128xf32>
    %cst_37 = arith.constant 1.000000e+00 : f32
    %77 = vector.broadcast %cst_37 : f32 to vector<16x128xf32>
    %78 = arith.addf %77, %76 : vector<16x128xf32>
    %79 = arith.mulf %73, %78 : vector<16x128xf32>
    %c0_38 = arith.constant 0 : index
    %c0_39 = arith.constant 0 : index
    %80 = vector.load %arg10[%c0_38, %c0_39] : memref<128x32xf32, #tpu.memory_space<vmem>>, vector<128x32xf32>
    %cst_40 = arith.constant dense<0.000000e+00> : vector<16x32xf32>
    %81 = tpu.matmul %79, %80, %cst_40 {dimension_numbers = #tpu.dot_dimension_numbers<[1], [0], [0], [1], [0, 0, 1, 1], [], []>} : vector<16x128xf32>, vector<128x32xf32>, vector<16x32xf32> -> vector<16x32xf32>
    %c0_41 = arith.constant 0 : index
    %c0_42 = arith.constant 0 : index
    %82 = vector.load %arg11[%c0_41, %c0_42] : memref<1x32xf32, #tpu.memory_space<vmem>>, vector<1x32xf32>
    %83 = vector.broadcast %82 : vector<1x32xf32> to vector<16x32xf32>
    %84 = arith.addf %81, %83 : vector<16x32xf32>
    %85 = arith.addf %66, %84 : vector<16x32xf32>
    %cst_43 = arith.constant dense<0.000000e+00> : vector<16xf32>
    %86 = vector.multi_reduction <add>, %85, %cst_43 [1] : vector<16x32xf32> to vector<16xf32>
    %87 = vector.shape_cast %86 : vector<16xf32> to vector<16x1xf32>
    %cst_44 = arith.constant 3.200000e+01 : f32
    %88 = vector.broadcast %cst_44 : f32 to vector<16x1xf32>
    %89 = arith.divf %87, %88 : vector<16x1xf32>
    %90 = vector.broadcast %89 : vector<16x1xf32> to vector<16x32xf32>
    %91 = arith.subf %85, %90 : vector<16x32xf32>
    %92 = arith.mulf %91, %91 : vector<16x32xf32>
    %cst_45 = arith.constant dense<0.000000e+00> : vector<16xf32>
    %93 = vector.multi_reduction <add>, %92, %cst_45 [1] : vector<16x32xf32> to vector<16xf32>
    %94 = vector.shape_cast %93 : vector<16xf32> to vector<16x1xf32>
    %cst_46 = arith.constant 3.200000e+01 : f32
    %95 = vector.broadcast %cst_46 : f32 to vector<16x1xf32>
    %96 = arith.divf %94, %95 : vector<16x1xf32>
    %cst_47 = arith.constant 9.99999974E-6 : f32
    %97 = vector.broadcast %cst_47 : f32 to vector<16x1xf32>
    %98 = arith.addf %96, %97 : vector<16x1xf32>
    %99 = math.rsqrt %98 : vector<16x1xf32>
    %100 = vector.broadcast %99 : vector<16x1xf32> to vector<16x32xf32>
    %101 = arith.mulf %91, %100 : vector<16x32xf32>
    %c0_48 = arith.constant 0 : index
    %c0_49 = arith.constant 0 : index
    %102 = vector.load %arg12[%c0_48, %c0_49] : memref<1x32xf32, #tpu.memory_space<vmem>>, vector<1x32xf32>
    %103 = vector.broadcast %102 : vector<1x32xf32> to vector<16x32xf32>
    %104 = arith.mulf %101, %103 : vector<16x32xf32>
    %c0_50 = arith.constant 0 : index
    %c0_51 = arith.constant 0 : index
    %105 = vector.load %arg13[%c0_50, %c0_51] : memref<1x32xf32, #tpu.memory_space<vmem>>, vector<1x32xf32>
    %106 = vector.broadcast %105 : vector<1x32xf32> to vector<16x32xf32>
    %107 = arith.addf %104, %106 : vector<16x32xf32>
    %c0_52 = arith.constant 0 : index
    %c0_53 = arith.constant 0 : index
    %108 = vector.load %arg14[%c0_52, %c0_53] : memref<16x32xf32, #tpu.memory_space<vmem>>, vector<16x32xf32>
    tpu.vector_store %arg14[%c0_52, %c0_53], %107 {strides = array<i32>} : memref<16x32xf32, #tpu.memory_space<vmem>>, vector<16x32xf32>,
    return
  }
  func.func @transform_0(%arg0: i32) -> (i32, i32) {
    %c0_i32 = arith.constant 0 : i32
    %c0_i32_0 = arith.constant 0 : i32
    return %arg0, %c0_i32 : i32, i32
  }
  func.func @transform_1(%arg0: i32) -> (i32, i32) {
    %c0_i32 = arith.constant 0 : i32
    %c0_i32_0 = arith.constant 0 : i32
    %c0_i32_1 = arith.constant 0 : i32
    return %c0_i32, %c0_i32_0 : i32, i32
  }
  func.func @transform_2(%arg0: i32) -> (i32, i32) {
    %c0_i32 = arith.constant 0 : i32
    %c0_i32_0 = arith.constant 0 : i32
    %c0_i32_1 = arith.constant 0 : i32
    return %c0_i32, %c0_i32_0 : i32, i32
  }
  func.func @transform_3(%arg0: i32) -> (i32, i32) {
    %c0_i32 = arith.constant 0 : i32
    %c0_i32_0 = arith.constant 0 : i32
    %c0_i32_1 = arith.constant 0 : i32
    return %c0_i32, %c0_i32_0 : i32, i32
  }
  func.func @transform_4(%arg0: i32) -> (i32, i32) {
    %c0_i32 = arith.constant 0 : i32
    %c0_i32_0 = arith.constant 0 : i32
    %c0_i32_1 = arith.constant 0 : i32
    return %c0_i32, %c0_i32_0 : i32, i32
  }
  func.func @transform_5(%arg0: i32) -> (i32, i32) {
    %c0_i32 = arith.constant 0 : i32
    %c0_i32_0 = arith.constant 0 : i32
    %c0_i32_1 = arith.constant 0 : i32
    return %c0_i32, %c0_i32_0 : i32, i32
  }
  func.func @transform_6(%arg0: i32) -> (i32, i32) {
    %c0_i32 = arith.constant 0 : i32
    %c0_i32_0 = arith.constant 0 : i32
    %c0_i32_1 = arith.constant 0 : i32
    return %c0_i32, %c0_i32_0 : i32, i32
  }
  func.func @transform_7(%arg0: i32) -> (i32, i32) {
    %c0_i32 = arith.constant 0 : i32
    %c0_i32_0 = arith.constant 0 : i32
    %c0_i32_1 = arith.constant 0 : i32
    return %c0_i32, %c0_i32_0 : i32, i32
  }
  func.func @transform_8(%arg0: i32) -> (i32, i32) {
    %c0_i32 = arith.constant 0 : i32
    %c0_i32_0 = arith.constant 0 : i32
    %c0_i32_1 = arith.constant 0 : i32
    return %c0_i32, %c0_i32_0 : i32, i32
  }
  func.func @transform_9(%arg0: i32) -> (i32, i32) {
    %c0_i32 = arith.constant 0 : i32
    %c0_i32_0 = arith.constant 0 : i32
    %c0_i32_1 = arith.constant 0 : i32
    return %c0_i32, %c0_i32_0 : i32, i32
  }
  func.func @transform_10(%arg0: i32) -> (i32, i32) {
    %c0_i32 = arith.constant 0 : i32
    %c0_i32_0 = arith.constant 0 : i32
    %c0_i32_1 = arith.constant 0 : i32
    return %c0_i32, %c0_i32_0 : i32, i32
  }
  func.func @transform_11(%arg0: i32) -> (i32, i32) {
    %c0_i32 = arith.constant 0 : i32
    %c0_i32_0 = arith.constant 0 : i32
    %c0_i32_1 = arith.constant 0 : i32
    return %c0_i32, %c0_i32_0 : i32, i32
  }
  func.func @transform_12(%arg0: i32) -> (i32, i32) {
    %c0_i32 = arith.constant 0 : i32
    %c0_i32_0 = arith.constant 0 : i32
    %c0_i32_1 = arith.constant 0 : i32
    return %c0_i32, %c0_i32_0 : i32, i32
  }
  func.func @transform_13(%arg0: i32) -> (i32, i32) {
    %c0_i32 = arith.constant 0 : i32
    %c0_i32_0 = arith.constant 0 : i32
    return %arg0, %c0_i32 : i32, i32
  }
}

</mosaic_0001>

<bundles_post_ra>
// kernel: tpu_custom_call.1
= control target key start
LH: loop header
LB: loop body
LE: loop exit
PB: predicated region body
PF: predicated region fallthrough
CT: control target
= control target key end

     0   :  { %18 = vsyncpa [#allocation3], 0  ;;  %s2187_s0 = inlined_call_operand.hbm [shape: f32[16,32], index: 0, kind: input, shape index: {}]   ;;  %s2188_s1 = inlined_call_operand.hbm [shape: f32[16,32], index: 1, kind: input, shape index: {}]   ;;  %s2189_s2 = inlined_call_operand.hbm [shape: f32[1,16], index: 2, kind: input, shape index: {}]   ;;  %s2190_s3 = inlined_call_operand.hbm [shape: f32[32,32], index: 3, kind: input, shape index: {}]   ;;  %s2191_s4 = inlined_call_operand.hbm [shape: f32[32,32], index: 4, kind: input, shape index: {}]   ;;  %s2192_s5 = inlined_call_operand.hbm [shape: f32[1,32], index: 5, kind: input, shape index: {}]   ;;  %s2193_s6 = inlined_call_operand.hbm [shape: f32[1,32], index: 6, kind: input, shape index: {}]   ;;  %s2194_s7 = inlined_call_operand.hbm [shape: f32[32,128], index: 7, kind: input, shape index: {}]   ;;  %s2195_s8 = inlined_call_operand.hbm [shape: f32[1,128], index: 8, kind: input, shape index: {}]   ;;  %s2196_s9 = inlined_call_operand.hbm [shape: f32[128,32], index: 9, kind: input, shape index: {}]   ;;  %s2197_s10 = inlined_call_operand.hbm [shape: f32[1,32], index: 10, kind: input, shape index: {}]   ;;  %s2198_s11 = inlined_call_operand.hbm [shape: f32[1,32], index: 11, kind: input, shape index: {}]   ;;  %s2199_s12 = inlined_call_operand.hbm [shape: f32[1,32], index: 12, kind: input, shape index: {}]   ;;  %s2200_s13 = inlined_call_operand.hbm [shape: f32[16,32], index: 13, kind: output, shape index: {}]  }
   0x1   :  { %19 = vsyncpa [#allocation6], 0 }
   0x2   :  { %20 = vsyncpa [#allocation9], 0 }
   0x3   :  { %21 = vsyncpa [#allocation12], 0 }
   0x4   :  { %22 = vsyncpa [#allocation15], 0 }
   0x5   :  { %23 = vsyncpa [#allocation18], 0 }
   0x6   :  { %24 = vsyncpa [#allocation21], 0 }
   0x7   :  { %25 = vsyncpa [#allocation4], 0  ;;  %s1853_s25 = smov [#allocation5]   ;;  %s1854_s27 = smov [#allocation8]  }
   0x8   :  { %s43_s26 = sshll.u32 %s1853_s25, 4  ;;  %s65_s28 = sshll.u32 %s1854_s27, 4  ;;  %s44_s26 = int_to_ptr.vmem [resolvable:$true] %s43_s26  ;;  %s1942_s28 = int_to_ptr.vmem [resolvable:$true] %s65_s28 }
   0x9   :  { %s1529_s14 = scalar_lea.hbm %s2188_s1, 256 }
   0xa   :  { %p1530_p0 = scmp.ne.s32.totalorder %s2188_s1, %s1529_s14  ;;  %p1533_p1 = scmp.lt.u32.totalorder %s1529_s14, %s2188_s1 }
   0xc   :  { %p1535_p2 = pnand %p1533_p1, %p1530_p0 }
   0xe   :  { %1538 = shalt.err (!%p1535_p2)
}
   0xf   :  { %s1539_s19 = scalar_lea.vmem %s44_s26, 256  ;;  %p1544_p4 = scmp.lt.s32.totalorder %s44_s26, %s44_s26 }
  0x10   :  { %p1540_p3 = scmp.ne.s32.totalorder %s44_s26, %s1539_s19  ;;  %p1545_p5 = scmp.lt.s32.totalorder %s1539_s19, %s1539_s19 }
  0x12   :  { %p1546_p6 = por %p1545_p5, %p1544_p4 }
  0x14   :  { %p1547_p7 = pnand %p1546_p6, %p1540_p3 }
  0x16   :  { %1550 = shalt.err (!%p1547_p7)
}
  0x17   :  { %s1855_s20 = smov 128   ;;  %s1856_s21 = smov 8  }
  0x18   :  { %49 = dma.hbm_to_vmem [thread:$0]  %s2188_s1, 256, %s44_s26, [#allocation6], %s1855_s20, %s1855_s20, %s1856_s21  }
  0x19   :  { %s1551_s27 = scalar_lea.hbm %s2190_s3, 512 }
  0x1a   :  { %p1552_p8 = scmp.ne.s32.totalorder %s2190_s3, %s1551_s27  ;;  %p1555_p9 = scmp.lt.u32.totalorder %s1551_s27, %s2190_s3 }
  0x1c   :  { %p1557_p10 = pnand %p1555_p9, %p1552_p8 }
  0x1e   :  { %1560 = shalt.err (!%p1557_p10)
}
  0x1f   :  { %s1561_s16 = scalar_lea.vmem %s1942_s28, 512  ;;  %p1566_p12 = scmp.lt.s32.totalorder %s1942_s28, %s1942_s28 }
  0x20   :  { %p1562_p11 = scmp.ne.s32.totalorder %s1942_s28, %s1561_s16  ;;  %p1567_p13 = scmp.lt.s32.totalorder %s1561_s16, %s1561_s16 }
  0x22   :  { %p1568_p0 = por %p1567_p13, %p1566_p12 }
  0x24   :  { %p1569_p1 = pnand %p1568_p0, %p1562_p11 }
  0x26   :  { %1572 = shalt.err (!%p1569_p1)
}
  0x27   :  { %71 = dma.hbm_to_vmem [thread:$0]  %s2190_s3, 512, %s1942_s28, [#allocation9], %s1855_s20, %s1855_s20, %s1856_s21  }
  0x28   :  { %s1857_s17 = smov [#allocation11]   ;;  %s1858_s19 = smov [#allocation14]  }
  0x29   :  { %s90_s18 = sshll.u32 %s1857_s17, 4  ;;  %s109_s22 = sshll.u32 %s1858_s19, 4  ;;  %s91_s18 = int_to_ptr.vmem [resolvable:$true] %s90_s18  ;;  %s1979_s22 = int_to_ptr.vmem [resolvable:$true] %s109_s22 }
  0x2a   :  { %s1573_s25 = scalar_lea.hbm %s2192_s5, 16 }
  0x2b   :  { %p1574_p2 = scmp.ne.s32.totalorder %s2192_s5, %s1573_s25  ;;  %p1577_p3 = scmp.lt.u32.totalorder %s1573_s25, %s2192_s5 }
  0x2d   :  { %p1579_p4 = pnand %p1577_p3, %p1574_p2 }
  0x2f   :  { %1582 = shalt.err (!%p1579_p4)
}
  0x30   :  { %s1583_s3 = scalar_lea.vmem %s91_s18, 16  ;;  %s1587_s28 = scalar_lea.vmem %s91_s18, 32 }
  0x31   :  { %p1584_p5 = scmp.ne.s32.totalorder %s91_s18, %s1583_s3  ;;  %p1588_p6 = scmp.lt.s32.totalorder %s91_s18, %s91_s18 }
  0x32   :  { %p1589_p7 = scmp.lt.s32.totalorder %s1587_s28, %s1583_s3 }
  0x34   :  { %p1590_p8 = por %p1589_p7, %p1588_p6 }
  0x36   :  { %p1591_p9 = pnand %p1590_p8, %p1584_p5 }
  0x38   :  { %1594 = shalt.err (!%p1591_p9)
}
  0x39   :  { %93 = dma.hbm_to_vmem [thread:$0]  %s2192_s5, 16, %s91_s18, [#allocation12]  }
  0x3a   :  { %s1595_s17 = scalar_lea.hbm %s2194_s7, 512 }
  0x3b   :  { %p1596_p10 = scmp.ne.s32.totalorder %s2194_s7, %s1595_s17  ;;  %p1599_p11 = scmp.lt.u32.totalorder %s1595_s17, %s2194_s7 }
  0x3d   :  { %p1601_p12 = pnand %p1599_p11, %p1596_p10 }
  0x3f   :  { %1604 = shalt.err (!%p1601_p12)
}
  0x40   :  { %s1605_s27 = scalar_lea.vmem %s1979_s22, 512  ;;  %p1610_p0 = scmp.lt.s32.totalorder %s1979_s22, %s1979_s22 }
  0x41   :  { %p1606_p13 = scmp.ne.s32.totalorder %s1979_s22, %s1605_s27  ;;  %p1611_p1 = scmp.lt.s32.totalorder %s1605_s27, %s1605_s27 }
  0x43   :  { %p1612_p2 = por %p1611_p1, %p1610_p0 }
  0x45   :  { %p1613_p3 = pnand %p1612_p2, %p1606_p13 }
  0x47   :  { %1616 = shalt.err (!%p1613_p3)
}
  0x48   :  { %115 = dma.hbm_to_vmem [thread:$0]  %s2194_s7, 512, %s1979_s22, [#allocation15], %s1855_s20, %s1855_s20, %s1856_s21  }
  0x49   :  { %s1859_s29 = smov [#allocation17]   ;;  %s1860_s14 = smov [#allocation20]  }
  0x4a   :  { %s131_s30 = sshll.u32 %s1859_s29, 4  ;;  %s154_s3 = sshll.u32 %s1860_s14, 4  ;;  %s132_s30 = int_to_ptr.vmem [resolvable:$true] %s131_s30  ;;  %s155_s3 = int_to_ptr.vmem [resolvable:$true] %s154_s3 }
  0x4b   :  { %s1617_s16 = scalar_lea.hbm %s2196_s9, 2048 }
  0x4c   :  { %p1618_p4 = scmp.ne.s32.totalorder %s2196_s9, %s1617_s16  ;;  %p1621_p5 = scmp.lt.u32.totalorder %s1617_s16, %s2196_s9 }
  0x4e   :  { %p1623_p6 = pnand %p1621_p5, %p1618_p4 }
  0x50   :  { %1626 = shalt.err (!%p1623_p6)
}
  0x51   :  { %s1627_s7 = scalar_lea.vmem %s132_s30, 2048  ;;  %p1632_p8 = scmp.lt.s32.totalorder %s132_s30, %s132_s30 }
  0x52   :  { %p1628_p7 = scmp.ne.s32.totalorder %s132_s30, %s1627_s7  ;;  %p1633_p9 = scmp.lt.s32.totalorder %s1627_s7, %s1627_s7 }
  0x54   :  { %p1634_p10 = por %p1633_p9, %p1632_p8 }
  0x56   :  { %p1635_p11 = pnand %p1634_p10, %p1628_p7 }
  0x58   :  { %1638 = shalt.err (!%p1635_p11)
}
  0x59   :  { %137 = dma.hbm_to_vmem [thread:$0]  %s2196_s9, 2048, %s132_s30, [#allocation18], %s1855_s20, %s1855_s20, %s1856_s21  }
  0x5a   :  { %s1639_s27 = scalar_lea.hbm %s2198_s11, 16 }
  0x5b   :  { %p1640_p12 = scmp.ne.s32.totalorder %s2198_s11, %s1639_s27  ;;  %p1643_p13 = scmp.lt.u32.totalorder %s1639_s27, %s2198_s11 }
  0x5d   :  { %p1645_p0 = pnand %p1643_p13, %p1640_p12 }
  0x5f   :  { %1648 = shalt.err (!%p1645_p0)
}
  0x60   :  { %s1649_s28 = scalar_lea.vmem %s155_s3, 16  ;;  %s1653_s15 = scalar_lea.vmem %s155_s3, 32 }
  0x61   :  { %p1650_p1 = scmp.ne.s32.totalorder %s155_s3, %s1649_s28  ;;  %p1654_p2 = scmp.lt.s32.totalorder %s155_s3, %s155_s3 }
  0x62   :  { %p1655_p3 = scmp.lt.s32.totalorder %s1653_s15, %s1649_s28 }
  0x64   :  { %p1656_p4 = por %p1655_p3, %p1654_p2 }
  0x66   :  { %p1657_p5 = pnand %p1656_p4, %p1650_p1 }
  0x68   :  { %1660 = shalt.err (!%p1657_p5)
}
  0x69   :  { %157 = dma.hbm_to_vmem [thread:$0]  %s2198_s11, 16, %s155_s3, [#allocation21]  }
  0x6a   :  { %s1861_s16 = smov [#allocation2]   ;;  %s1862_s26 = smov [#allocation7]  }
  0x6b   :  { %s31_s1 = sshll.u32 %s1861_s16, 4  ;;  %s56_s17 = sshll.u32 %s1862_s26, 4  ;;  %s32_s1 = int_to_ptr.vmem [resolvable:$true] %s31_s1  ;;  %s57_s17 = int_to_ptr.vmem [resolvable:$true] %s56_s17 }
  0x6c   :  { %s1661_s22 = scalar_lea.hbm %s2187_s0, 256 }
  0x6d   :  { %p1662_p6 = scmp.ne.s32.totalorder %s2187_s0, %s1661_s22  ;;  %p1665_p7 = scmp.lt.u32.totalorder %s1661_s22, %s2187_s0 }
  0x6f   :  { %p1667_p8 = pnand %p1665_p7, %p1662_p6 }
  0x71   :  { %1670 = shalt.err (!%p1667_p8)
}
  0x72   :  { %s1671_s11 = scalar_lea.vmem %s32_s1, 256  ;;  %p1676_p10 = scmp.lt.s32.totalorder %s32_s1, %s32_s1 }
  0x73   :  { %p1672_p9 = scmp.ne.s32.totalorder %s32_s1, %s1671_s11  ;;  %p1677_p11 = scmp.lt.s32.totalorder %s1671_s11, %s1671_s11 }
  0x75   :  { %p1678_p12 = por %p1677_p11, %p1676_p10 }
  0x77   :  { %p1679_p13 = pnand %p1678_p12, %p1672_p9 }
  0x79   :  { %1682 = shalt.err (!%p1679_p13)
}
  0x7a   :  { %37 = dma.hbm_to_vmem [thread:$0]  %s2187_s0, 256, %s32_s1, [#allocation3], %s1855_s20, %s1855_s20, %s1856_s21  }
  0x7b   :  { %s1683_s14 = scalar_lea.hbm %s2189_s2, 16 }
  0x7c   :  { %p1684_p0 = scmp.ne.s32.totalorder %s2189_s2, %s1683_s14  ;;  %p1687_p1 = scmp.lt.u32.totalorder %s1683_s14, %s2189_s2 }
  0x7e   :  { %p1689_p2 = pnand %p1687_p1, %p1684_p0 }
  0x80   :  { %1692 = shalt.err (!%p1689_p2)
}
  0x81   :  { %s1693_s16 = scalar_lea.vmem %s57_s17, 16  ;;  %s1697_s26 = scalar_lea.vmem %s57_s17, 32 }
  0x82   :  { %p1694_p3 = scmp.ne.s32.totalorder %s57_s17, %s1693_s16  ;;  %p1698_p4 = scmp.lt.s32.totalorder %s57_s17, %s57_s17 }
  0x83   :  { %p1699_p5 = scmp.lt.s32.totalorder %s1697_s26, %s1693_s16 }
  0x85   :  { %p1700_p6 = por %p1699_p5, %p1698_p4 }
  0x87   :  { %p1701_p7 = pnand %p1700_p6, %p1694_p3 }
  0x89   :  { %1704 = shalt.err (!%p1701_p7)
}
  0x8a   :  { %59 = dma.hbm_to_vmem [thread:$0]  %s2189_s2, 16, %s57_s17, [#allocation6]  }
  0x8b   :  { %s1863_s19 = smov [#allocation10]   ;;  %s1864_s22 = smov [#allocation13]  }
  0x8c   :  { %s77_s7 = sshll.u32 %s1863_s19, 4  ;;  %s100_s23 = sshll.u32 %s1864_s22, 4  ;;  %s78_s7 = int_to_ptr.vmem [resolvable:$true] %s77_s7  ;;  %s101_s23 = int_to_ptr.vmem [resolvable:$true] %s100_s23 }
  0x8d   :  { %s1705_s27 = scalar_lea.hbm %s2191_s4, 512 }
  0x8e   :  { %p1706_p8 = scmp.ne.s32.totalorder %s2191_s4, %s1705_s27  ;;  %p1709_p9 = scmp.lt.u32.totalorder %s1705_s27, %s2191_s4 }
  0x90   :  { %p1711_p10 = pnand %p1709_p9, %p1706_p8 }
  0x92   :  { %1714 = shalt.err (!%p1711_p10)
}
  0x93   :  { %s1715_s2 = scalar_lea.vmem %s78_s7, 512  ;;  %p1720_p12 = scmp.lt.s32.totalorder %s78_s7, %s78_s7 }
  0x94   :  { %p1716_p11 = scmp.ne.s32.totalorder %s78_s7, %s1715_s2  ;;  %p1721_p13 = scmp.lt.s32.totalorder %s1715_s2, %s1715_s2 }
  0x96   :  { %p1722_p0 = por %p1721_p13, %p1720_p12 }
  0x98   :  { %p1723_p1 = pnand %p1722_p0, %p1716_p11 }
  0x9a   :  { %1726 = shalt.err (!%p1723_p1)
}
  0x9b   :  { %83 = dma.hbm_to_vmem [thread:$0]  %s2191_s4, 512, %s78_s7, [#allocation9], %s1855_s20, %s1855_s20, %s1856_s21  }
  0x9c   :  { %s1727_s15 = scalar_lea.hbm %s2193_s6, 16 }
  0x9d   :  { %p1728_p2 = scmp.ne.s32.totalorder %s2193_s6, %s1727_s15  ;;  %p1731_p3 = scmp.lt.u32.totalorder %s1727_s15, %s2193_s6 }
  0x9f   :  { %p1733_p4 = pnand %p1731_p3, %p1728_p2 }
  0xa1   :  { %1736 = shalt.err (!%p1733_p4)
}
  0xa2   :  { %s1737_s0 = scalar_lea.vmem %s101_s23, 16  ;;  %s1741_s1 = scalar_lea.vmem %s101_s23, 32 }
  0xa3   :  { %p1738_p5 = scmp.ne.s32.totalorder %s101_s23, %s1737_s0  ;;  %p1742_p6 = scmp.lt.s32.totalorder %s101_s23, %s101_s23 }
  0xa4   :  { %p1743_p7 = scmp.lt.s32.totalorder %s1741_s1, %s1737_s0 }
  0xa6   :  { %p1744_p8 = por %p1743_p7, %p1742_p6 }
  0xa8   :  { %p1745_p9 = pnand %p1744_p8, %p1738_p5 }
  0xaa   :  { %1748 = shalt.err (!%p1745_p9)
}
  0xab   :  { %103 = dma.hbm_to_vmem [thread:$0]  %s2193_s6, 16, %s101_s23, [#allocation12]  }
  0xac   :  { %s1865_s7 = smov [#allocation16]   ;;  %s1866_s24 = smov [#allocation19]  }
  0xad   :  { %s122_s22 = sshll.u32 %s1865_s7, 4  ;;  %s144_s25 = sshll.u32 %s1866_s24, 4  ;;  %s123_s22 = int_to_ptr.vmem [resolvable:$true] %s122_s22  ;;  %s145_s25 = int_to_ptr.vmem [resolvable:$true] %s144_s25 }
  0xae   :  { %s1749_s3 = scalar_lea.hbm %s2195_s8, 16 }
  0xaf   :  { %p1750_p10 = scmp.ne.s32.totalorder %s2195_s8, %s1749_s3  ;;  %p1753_p11 = scmp.lt.u32.totalorder %s1749_s3, %s2195_s8 }
  0xb1   :  { %p1755_p12 = pnand %p1753_p11, %p1750_p10 }
  0xb3   :  { %1758 = shalt.err (!%p1755_p12)
}
  0xb4   :  { %s1759_s6 = scalar_lea.vmem %s123_s22, 16  ;;  %s1763_s23 = scalar_lea.vmem %s123_s22, 32 }
  0xb5   :  { %p1760_p13 = scmp.ne.s32.totalorder %s123_s22, %s1759_s6  ;;  %p1764_p0 = scmp.lt.s32.totalorder %s123_s22, %s123_s22 }
  0xb6   :  { %p1765_p1 = scmp.lt.s32.totalorder %s1763_s23, %s1759_s6 }
  0xb8   :  { %p1766_p2 = por %p1765_p1, %p1764_p0 }
  0xba   :  { %p1767_p3 = pnand %p1766_p2, %p1760_p13 }
  0xbc   :  { %1770 = shalt.err (!%p1767_p3)
}
  0xbd   :  { %125 = dma.hbm_to_vmem [thread:$0]  %s2195_s8, 16, %s123_s22, [#allocation15]  }
  0xbe   :  { %s1771_s9 = scalar_lea.hbm %s2197_s10, 16 }
  0xbf   :  { %p1772_p4 = scmp.ne.s32.totalorder %s2197_s10, %s1771_s9  ;;  %p1775_p5 = scmp.lt.u32.totalorder %s1771_s9, %s2197_s10 }
  0xc1   :  { %p1777_p6 = pnand %p1775_p5, %p1772_p4 }
  0xc3   :  { %1780 = shalt.err (!%p1777_p6)
}
  0xc4   :  { %s1781_s1 = scalar_lea.vmem %s145_s25, 16  ;;  %s1785_s4 = scalar_lea.vmem %s145_s25, 32 }
  0xc5   :  { %p1782_p7 = scmp.ne.s32.totalorder %s145_s25, %s1781_s1  ;;  %p1786_p8 = scmp.lt.s32.totalorder %s145_s25, %s145_s25 }
  0xc6   :  { %p1787_p9 = scmp.lt.s32.totalorder %s1785_s4, %s1781_s1 }
  0xc8   :  { %p1788_p10 = por %p1787_p9, %p1786_p8 }
  0xca   :  { %p1789_p11 = pnand %p1788_p10, %p1782_p7 }
  0xcc   :  { %1792 = shalt.err (!%p1789_p11)
}
  0xcd   :  { %147 = dma.hbm_to_vmem [thread:$0]  %s2197_s10, 16, %s145_s25, [#allocation18]  }
  0xce   :  { %s1867_s7 = smov [#allocation22]   ;;  %s1793_s11 = scalar_lea.hbm %s2199_s12, 16 }
  0xcf   :  { %s164_s22 = sshll.u32 %s1867_s7, 4  ;;  %p1794_p12 = scmp.ne.s32.totalorder %s2199_s12, %s1793_s11  ;;  %s165_s22 = int_to_ptr.vmem [resolvable:$true] %s164_s22 }
  0xd0   :  { %p1797_p13 = scmp.lt.u32.totalorder %s1793_s11, %s2199_s12 }
  0xd2   :  { %p1799_p0 = pnand %p1797_p13, %p1794_p12 }
  0xd4   :  { %1802 = shalt.err (!%p1799_p0)
}
  0xd5   :  { %s1803_s17 = scalar_lea.vmem %s165_s22, 16  ;;  %s1807_s10 = scalar_lea.vmem %s165_s22, 32 }
  0xd6   :  { %p1804_p1 = scmp.ne.s32.totalorder %s165_s22, %s1803_s17  ;;  %p1808_p2 = scmp.lt.s32.totalorder %s165_s22, %s165_s22 }
  0xd7   :  { %p1809_p3 = scmp.lt.s32.totalorder %s1807_s10, %s1803_s17 }
  0xd9   :  { %p1810_p4 = por %p1809_p3, %p1808_p2 }
  0xdb   :  { %p1811_p5 = pnand %p1810_p4, %p1804_p1 }
  0xdd   :  { %1814 = shalt.err (!%p1811_p5)
}
  0xde   :  { %167 = dma.hbm_to_vmem [thread:$0]  %s2199_s12, 16, %s165_s22, [#allocation21]  }
  0xdf   :  { %1837 = dma.done.wait [#allocation3], 256  }
  0xe0   :  { %1838 = vsyncadd [#allocation3], 4294967040 }
  0xe1   :  { %1839 = dma.done.wait [#allocation6], 272  }
  0xe2   :  { %1840 = vsyncadd [#allocation6], 4294967024 }
  0xe3   :  { %1841 = dma.done.wait [#allocation9], 1024  }
  0xe4   :  { %1842 = vsyncadd [#allocation9], 4294966272 }
  0xe5   :  { %1843 = dma.done.wait [#allocation12], 32  }
  0xe6   :  { %1844 = vsyncadd [#allocation12], 4294967264 }
  0xe7   :  { %1845 = dma.done.wait [#allocation15], 528  }
  0xe8   :  { %1846 = vsyncadd [#allocation15], 4294966768 }
  0xe9   :  { %1847 = dma.done.wait [#allocation18], 2064  }
  0xea   :  { %1848 = vsyncadd [#allocation18], 4294965232 }
  0xeb   :  { %1849 = dma.done.wait [#allocation21], 32  }
  0xec   :  { %1850 = vsyncadd [#allocation21], 4294967264  ;;  %vm221_vm0 = vcmask 261120   ;;  %v209_v0 = vld [vmem:[#allocation5] sm:$0xff]  ;;  %v210_v1 = vld [vmem:[#allocation5 + $0x8] sm:$0xff]  ;;  %v355_v29 = vlaneseq  ;;  %vm377_vm2 = vcmask 130048  }
  0xed   :  { %vm1419_vm1 = vmpackc.low %vm221_vm0, %vm221_vm0  ;;  %v2132_v2 = vld [vmem:[#allocation2] sm:$0xff]  ;;  %v228_v3 = vmul.f32 %v209_v0, %v209_v0  ;;  %v229_v4 = vmul.f32 %v210_v1, %v210_v1  ;;  %v1418_v5 = vpack.c.bf16 %v210_v1, %v209_v0  ;;  %v2136_v6 = vld [vmem:[#allocation2 + $0x8] sm:$0xff]  ;;  %vm501_vm3 = vcmask 64512   ;;  %s1871_s12 = smov [#allocation23]  }
  0xee   :  { %1323 = vmatprep.mubr.msk.f32.mxu1 %vm221_vm0, %v2132_v2  ;;  %v219_v7 = vmul.f32 %v2132_v2, %v2132_v2  ;;  %v220_v8 = vmul.f32 %v2136_v6, %v2136_v6  ;;  %v390_v15 = vld [vmem:[#allocation8] sm:$0xff]  ;;  %v391_v16 = vld [vmem:[#allocation8 + $0x8] sm:$0xff]  ;;  %v392_v17 = vld [vmem:[#allocation8 + $0x10] sm:$0xff]  ;;  %v356_v30 = vshrl.u32 %v355_v29, 7  ;;  %vm1869_vm4 = vmmov 0   ;;  %s1227_s23 = sshll.u32 %s1871_s12, 4  ;;  %s1228_s23 = int_to_ptr.vmem [resolvable:$true] %s1227_s23 }
  0xef   :  { %v230_v9 = vsel %vm221_vm0, %v228_v3, 0.0  ;;  %1420 = vmatprep.subr.msk.bf16.mxu1 %vm1419_vm1, %v1418_v5  ;;  %v233_v11 = vsel %vm221_vm0, %v229_v4, 0.0  ;;  %v1424_v18 = vpack.c.bf16 %v391_v16, %v390_v15  ;;  %v393_v19 = vld [vmem:[#allocation8 + $0x18] sm:$0xff]  ;;  %v1868_v4 = vmov 0.0|0.0   ;;  %v844_v16 = vld [vmem:[#allocation10 + $0x10] sm:$0xff]  ;;  %s1815_s29 = scalar_lea.vmem %s1228_s23, 256  ;;  %p1820_p7 = scmp.lt.s32.totalorder %s1228_s23, %s1228_s23 }
  0xf0   :  { %v222_v10 = vsel %vm221_vm0, %v219_v7, 0.0  ;;  %231 = vadd.xlane.f32.xlu0 %v230_v9  ;;  %1423 = vmatpush3.bf16.xpose.msk.msra.mxu1 %vm1419_vm1, %v1418_v5  ;;  %v225_v12 = vsel %vm221_vm0, %v220_v8, 0.0  ;;  %v1428_v20 = vpack.c.bf16 %v393_v19, %v392_v17  ;;  %v211_v23 = vld [vmem:[#allocation7] sm:$0x1]  ;;  %v357_v33 = vsub.s32 0, %v356_v30  ;;  %p1816_p6 = scmp.ne.s32.totalorder %s1228_s23, %s1815_s29  ;;  %p1821_p8 = scmp.lt.s32.totalorder %s1815_s29, %s1815_s29 }
  0xf1   :  { %223 = vadd.xlane.f32.xlu1 %v222_v10  ;;  %1425 = vmatprep.subr.bf16.mxu1 %v1424_v18  ;;  %v212_v24 = vmul.f32 1.442695, %v211_v23  ;;  %v1870_v5 = vmov 0.0   ;;  %v842_v10 = vld [vmem:[#allocation10] sm:$0xff]  ;;  %v845_v17 = vld [vmem:[#allocation10 + $0x18] sm:$0xff] }
  0xf2   :  { %p1822_p9 = por %p1821_p8, %p1820_p7 }
  0xf3   :  { %1505 = vpow2.f32 %v212_v24 }
  0xf4   :  { %234 = vadd.xlane.f32.xlu0 %v233_v11  ;;  %v843_v11 = vld [vmem:[#allocation10 + $0x8] sm:$0xff]  ;;  %p1823_p10 = pnand %p1822_p9, %p1816_p6 }
  0xf5   :  { %226 = vadd.xlane.f32.xlu1 %v225_v12 }
  0xf7   :  { %1324 = vmatmul.mubr.msk.f32.vlgmr.msra.gmra.mrb[0].mxu1 %vm221_vm0, %v2136_v6 }
  0xf8   :  { %1334 = vmatprep.mubr.msk.f32.mxu1 %vm221_vm0, %v2132_v2  ;;  %1427 = vmatpush3.bf16.msra.mxu1 %v1424_v18  ;;  %v1442_v18 = vpack.c.bf16 %v845_v17, %v844_v16  ;;  %v1089_v16 = vld [vmem:[#allocation17 + $0x68] sm:$0xff] }
  0xf9   :  { %1429 = vmatprep.subr.bf16.mxu1 %v1428_v20 }
  0xfc   :  { %1431 = vmatpush3.bf16.msra.mxu1 %v1428_v20 }
  0xfd   :  { %v1506_v25 = vpop.eup %1505 }
  0xfe   :  { %v214_v26 = vmax.f32 %v1506_v25, 0.1 }
  0xff   :  { %1335 = vmatmul.mubr.msk.f32.vlgmr.msra.gmra.mrb[2].mxu1 %vm221_vm0, %v2136_v6 }
 0x100   :  { %v215_v27 = vmin.f32 %v214_v26, 2.0 }
 0x102   :  { %v216_v28 = vmul.f32 %v215_v27, %v215_v27 }
 0x104   :  { %1507 = vrcp.f32 %v216_v28 }
 0x10e   :  { %v1508_v32 = vpop.eup %1507 }
 0x10f   :  { %v218_v34 = vmul.f32 -0.5, %v1508_v32 }
 0x111   :  { %v369_v40 = vrot.slane %v218_v34, %v357_v33 }
 0x17d   :  { %v232_v13 = vpop.xlane.xlu0 %231 }
 0x17e   :  { %236 = vxpose.xlu0.b32.start [1/2] (short) (narrow) %v232_v13, 8  ;;  %v224_v31 = vpop.xlane.xlu1 %223 }
 0x181   :  { %v235_v14 = vpop.xlane.xlu0 %234 }
 0x182   :  { %237 = vxpose.xlu0.b32.end [2/2] (short) (narrow) %v235_v14, 8  ;;  %v227_v36 = vpop.xlane.xlu1 %226  ;;  %v1438_v14 = vpack.c.bf16 %v843_v11, %v842_v10  ;;  %v1085_v10 = vld [vmem:[#allocation17 + $0x48] sm:$0xff] }
 0x1ca   :  { %v1325_v21 = vpop.f32.mrb[0].mxu1 }
 0x1cb   :  { %v346_v22 = vpop.f32.mrb[1].mxu1  ;;  %v362_v38 = vmul.f32 2.0, %v1325_v21 }
 0x1cc   :  { %v361_v39 = vmul.f32 2.0, %v346_v22 }
 0x1d2   :  { %v1336_v59 = vpop.f32.mrb[2].mxu1 }
 0x1d3   :  { %v460_v61 = vpop.f32.mrb[3].mxu1  ;;  %1342 = vmatprep.subr.mxu1 %v1336_v59 }
 0x1d4   :  { %1337 = vmatprep.subr.mxu0 %v460_v61  ;;  %1343 = vmatpush3.msra.mxu1 %v1336_v59  ;;  %v1259_v59 = vld [vmem:[#allocation11] ss:$0 sm:$0xff] }
 0x1d5   :  { %1338 = vmatpush3.msra.mxu0 %v460_v61  ;;  %1435 = vmatprep.subr.bf16.mxu1 %v1868_v4 }
 0x1d6   :  { %1432 = vmatprep.subr.bf16.mxu0 %v1868_v4 }
 0x1fe   :  { %v252_v35 = vpop.trf.xlu0 }
 0x1ff   :  { %v358_v37 = vrot.slane %v252_v35, %v357_v33 }
 0x201   :  { %v359_v41 = vadd.f32 %v358_v37, %v224_v31  ;;  %v360_v42 = vadd.f32 %v358_v37, %v227_v36 }
 0x203   :  { %v363_v43 = vsub.f32 %v359_v41, %v361_v39  ;;  %v364_v44 = vsub.f32 %v360_v42, %v362_v38  ;;  %v975_v38 = vld [vmem:[#allocation14 + $0x8] sm:$0xff]  ;;  %v977_v41 = vld [vmem:[#allocation14 + $0x18] sm:$0xff] }
 0x205   :  { %v371_v45 = vmul.f32 %v369_v40, %v363_v43  ;;  %v372_v46 = vmul.f32 %v369_v40, %v364_v44  ;;  %v976_v40 = vld [vmem:[#allocation14 + $0x10] sm:$0xff]  ;;  %v1076_v43 = vld [vmem:[#allocation17] sm:$0xff] }
 0x206   :  { %v1450_v42 = vpack.c.bf16 %v977_v41, %v976_v40  ;;  %v1077_v44 = vld [vmem:[#allocation17 + $0x8] sm:$0xff] }
 0x207   :  { %v373_v47 = vmul.f32 1.442695, %v371_v45  ;;  %v375_v48 = vmul.f32 1.442695, %v372_v46  ;;  %v1078_v45 = vld [vmem:[#allocation17 + $0x10] sm:$0xff]  ;;  %v1454_v46 = vpack.c.bf16 %v1077_v44, %v1076_v43 }
 0x209   :  { %1509 = vpow2.f32 %v373_v47  ;;  %v1079_v47 = vld [vmem:[#allocation17 + $0x18] sm:$0xff] }
 0x20a   :  { %1511 = vpow2.f32 %v375_v48  ;;  %v1458_v48 = vpack.c.bf16 %v1079_v47, %v1078_v45 }
 0x213   :  { %v1510_v49 = vpop.eup %1509 }
 0x214   :  { %v378_v50 = vsel %vm377_vm2, %v1510_v49, 0.0  ;;  %v1512_v51 = vpop.eup %1511 }
 0x215   :  { %379 = vadd.xlane.f32.xlu1 %v378_v50  ;;  %v381_v52 = vsel %vm377_vm2, %v1512_v51, 0.0  ;;  %v1081_v50 = vld [vmem:[#allocation17 + $0x28] sm:$0xff] }
 0x219   :  { %382 = vadd.xlane.f32.xlu1 %v381_v52 }
 0x2a2   :  { %v380_v53 = vpop.xlane.xlu1 %379 }
 0x2a3   :  { %v384_v54 = vadd.f32 1e-08, %v380_v53 }
 0x2a5   :  { %1513 = vrcp.f32 %v384_v54 }
 0x2a6   :  { %v383_v55 = vpop.xlane.xlu1 %382 }
 0x2a7   :  { %v385_v56 = vadd.f32 1e-08, %v383_v55 }
 0x2a9   :  { %1515 = vrcp.f32 %v385_v56 }
 0x2af   :  { %v1514_v57 = vpop.eup %1513 }
 0x2b0   :  { %v388_v58 = vmul.f32 %v1514_v57, %v1510_v49  ;;  %v1080_v49 = vld [vmem:[#allocation17 + $0x20] sm:$0xff] }
 0x2b2   :  { %469 = vxpose.xlu1.b32.start.end [1/1] (short) (narrow) %v388_v58, 16 }
 0x2b3   :  { %v1516_v60 = vpop.eup %1515 }
 0x2b4   :  { %v389_v62 = vmul.f32 %v1516_v60, %v1512_v51  ;;  %v1462_v51 = vpack.c.bf16 %v1081_v50, %v1080_v49 }
 0x2b6   :  { %583 = vxpose.xlu0.b32.start.end [1/1] (short) (narrow) %v389_v62, 16 }
 0x332   :  { %v485_v63 = vpop.trf.xlu1 }
 0x333   :  { %1339 = vmatprep.mubr.msk.f32.mxu0 %vm501_vm3, %v485_v63 }
 0x336   :  { %v599_v0 = vpop.trf.xlu0  ;;  %v486_v1 = vpop.trf.xlu1 }
 0x337   :  { %1340 = vmatmul.mubr.msk.f32.vlgmr.msra.gmra.mrb[0].mxu0 %vm501_vm3, %v486_v1  ;;  %1344 = vmatprep.mubr.msk.f32.mxu1 %vm501_vm3, %v599_v0  ;;  %v1260_v0 = vld [vmem:[#allocation13] ss:$0 sm:$0xff] }
 0x338   :  { %1351 = vmatprep.mubr.msk.f32.mxu0 %vm1869_vm4, %v1870_v5 }
 0x33a   :  { %v600_v3 = vpop.trf.xlu0 }
 0x33b   :  { %1345 = vmatmul.mubr.msk.f32.vlgmr.msra.gmra.mrb[4].mxu1 %vm501_vm3, %v600_v3 }
 0x33c   :  { %1358 = vmatprep.mubr.msk.f32.mxu1 %vm1869_vm4, %v1870_v5  ;;  %v1082_v5 = vld [vmem:[#allocation17 + $0x30] sm:$0xff] }
 0x40a   :  { %v1341_v7 = vpop.f32.mrb[0].mxu0 }
 0x40b   :  { %v574_v8 = vpop.f32.mrb[1].mxu0 }
 0x40c   :  { %v1433_v9 = vpack.c.bf16 %v1341_v7, %v574_v8  ;;  %v1083_v7 = vld [vmem:[#allocation17 + $0x38] sm:$0xff] }
 0x40d   :  { %v1466_v8 = vpack.c.bf16 %v1083_v7, %v1082_v5 }
 0x40e   :  { %v1346_v12 = vpop.f32.mrb[4].mxu1  ;;  %1434 = vmatpush3.bf16.msra.mxu0 %v1433_v9  ;;  %v1084_v9 = vld [vmem:[#allocation17 + $0x40] sm:$0xff] }
 0x40f   :  { %v687_v13 = vpop.f32.mrb[5].mxu1  ;;  %1455 = vmatprep.subr.bf16.mxu0 %v1454_v46  ;;  %v1470_v11 = vpack.c.bf16 %v1085_v10, %v1084_v9 }
 0x410   :  { %v1436_v15 = vpack.c.bf16 %v1346_v12, %v687_v13  ;;  %v1086_v12 = vld [vmem:[#allocation17 + $0x50] sm:$0xff]  ;;  %v1087_v13 = vld [vmem:[#allocation17 + $0x58] sm:$0xff] }
 0x411   :  { %1352 = vmatmul.mubr.msk.f32.vlgmr.msra.gmra.mrb[2].mxu0 %vm377_vm2, %v388_v58 }
 0x412   :  { %1437 = vmatpush3.bf16.msra.mxu1 %v1436_v15  ;;  %1457 = vmatpush3.bf16.msra.mxu0 %v1454_v46  ;;  %v1088_v15 = vld [vmem:[#allocation17 + $0x60] sm:$0xff] }
 0x413   :  { %1439 = vmatprep.subr.bf16.mxu1 %v1438_v14  ;;  %1459 = vmatprep.subr.bf16.mxu0 %v1458_v48  ;;  %v1478_v17 = vpack.c.bf16 %v1089_v16, %v1088_v15 }
 0x415   :  { %1359 = vmatmul.mubr.msk.f32.vlgmr.msra.gmra.mrb[6].mxu1 %vm377_vm2, %v389_v62 }
 0x416   :  { %1441 = vmatpush3.bf16.msra.mxu1 %v1438_v14  ;;  %1461 = vmatpush3.bf16.msra.mxu0 %v1458_v48  ;;  %v1474_v14 = vpack.c.bf16 %v1087_v13, %v1086_v12 }
 0x417   :  { %1443 = vmatprep.subr.bf16.mxu1 %v1442_v18  ;;  %1463 = vmatprep.subr.bf16.mxu0 %v1462_v51 }
 0x41a   :  { %1445 = vmatpush3.bf16.msra.mxu1 %v1442_v18  ;;  %1465 = vmatpush3.bf16.msra.mxu0 %v1462_v51  ;;  %v1090_v18 = vld [vmem:[#allocation17 + $0x70] sm:$0xff] }
 0x41b   :  { %1467 = vmatprep.subr.bf16.mxu0 %v1466_v8 }
 0x41e   :  { %1469 = vmatpush3.bf16.msra.mxu0 %v1466_v8 }
 0x41f   :  { %1471 = vmatprep.subr.bf16.mxu0 %v1470_v11 }
 0x422   :  { %1473 = vmatpush3.bf16.msra.mxu0 %v1470_v11 }
 0x423   :  { %1475 = vmatprep.subr.bf16.mxu0 %v1474_v14 }
 0x426   :  { %1477 = vmatpush3.bf16.msra.mxu0 %v1474_v14 }
 0x427   :  { %1479 = vmatprep.subr.bf16.mxu0 %v1478_v17 }
 0x42a   :  { %1481 = vmatpush3.bf16.msra.mxu0 %v1478_v17 }
 0x4e4   :  { %v765_v19 = vpop.f32.mrb[2].mxu0 }
 0x4e5   :  { %v1353_v20 = vpop.f32.mrb[3].mxu0  ;;  %1369 = vmatprep.mubr.msk.f32.mxu1 %vm221_vm0, %v765_v19  ;;  %v1091_v19 = vld [vmem:[#allocation17 + $0x78] sm:$0xff] }
 0x4e6   :  { %v1482_v20 = vpack.c.bf16 %v1091_v19, %v1090_v18 }
 0x4e8   :  { %v838_v21 = vpop.f32.mrb[6].mxu1  ;;  %1483 = vmatprep.subr.bf16.mxu0 %v1482_v20 }
 0x4e9   :  { %v1360_v22 = vpop.f32.mrb[7].mxu1  ;;  %1370 = vmatmul.mubr.msk.f32.vlgmr.msra.gmra.mrb[8].mxu1 %vm221_vm0, %v838_v21  ;;  %1485 = vmatpush3.bf16.msra.mxu0 %v1482_v20  ;;  %v1261_v21 = vld [vmem:[#allocation16] ss:$0 sm:$0xff] }
 0x5bc   :  { %v1371_v23 = vpop.f32.mrb[8].mxu1 }
 0x5bd   :  { %v928_v24 = vadd.f32 %v1371_v23, %v2136_v6  ;;  %v918_v25 = vpop.f32.mrb[9].mxu1 }
 0x5be   :  { %v927_v26 = vadd.f32 %v918_v25, %v2132_v2  ;;  %v974_v2 = vld [vmem:[#allocation14] sm:$0xff] }
 0x5bf   :  { %v932_v27 = vsel %vm221_vm0, %v928_v24, 0.0  ;;  %v1446_v39 = vpack.c.bf16 %v975_v38, %v974_v2 }
 0x5c0   :  { %933 = vadd.xlane.f32.xlu1 %v932_v27  ;;  %v929_v28 = vsel %vm221_vm0, %v927_v26, 0.0 }
 0x5c1   :  { %930 = vadd.xlane.f32.xlu0 %v929_v28  ;;  %1447 = vmatprep.subr.bf16.mxu1 %v1446_v39 }
 0x5c2   :  { %1449 = vmatpush3.bf16.msra.mxu1 %v1446_v39 }
 0x5c3   :  { %1451 = vmatprep.subr.bf16.mxu1 %v1450_v42 }
 0x5c6   :  { %1453 = vmatpush3.bf16.msra.mxu1 %v1450_v42 }
 0x64d   :  { %v934_v29 = vpop.xlane.xlu1 %933 }
 0x64e   :  { %v937_v30 = vmul.f32 0.03125, %v934_v29  ;;  %v931_v31 = vpop.xlane.xlu0 %930 }
 0x64f   :  { %v936_v32 = vmul.f32 0.03125, %v931_v31 }
 0x650   :  { %v939_v33 = vsub.f32 %v928_v24, %v937_v30 }
 0x651   :  { %v938_v34 = vsub.f32 %v927_v26, %v936_v32 }
 0x652   :  { %v941_v35 = vmul.f32 %v939_v33, %v939_v33 }
 0x653   :  { %v940_v36 = vmul.f32 %v938_v34, %v938_v34 }
 0x654   :  { %v945_v37 = vsel %vm221_vm0, %v941_v35, 0.0 }
 0x655   :  { %946 = vadd.xlane.f32.xlu1 %v945_v37  ;;  %v942_v6 = vsel %vm221_vm0, %v940_v36, 0.0  ;;  %v1264_v36 = vld [vmem:[#allocation19] ss:$0 sm:$0xff] }
 0x656   :  { %943 = vadd.xlane.f32.xlu0 %v942_v6 }
 0x6e2   :  { %v947_v52 = vpop.xlane.xlu1 %946 }
 0x6e3   :  { %v949_v53 = vmul.f32 0.03125, %v947_v52  ;;  %v944_v54 = vpop.xlane.xlu0 %943 }
 0x6e4   :  { %v948_v55 = vmul.f32 0.03125, %v944_v54 }
 0x6e5   :  { %v951_v56 = vadd.f32 1e-05, %v949_v53 }
 0x6e6   :  { %v950_v57 = vadd.f32 1e-05, %v948_v55 }
 0x6e7   :  { %1517 = vrsqrt.f32 %v951_v56 }
 0x6e8   :  { %1519 = vrsqrt.f32 %v950_v57 }
 0x6f1   :  { %v1518_v58 = vpop.eup %1517 }
 0x6f2   :  { %v1520_v60 = vpop.eup %1519  ;;  %v955_v61 = vmul.f32 %v1518_v58, %v939_v33 }
 0x6f3   :  { %v954_v62 = vmul.f32 %v1520_v60, %v938_v34  ;;  %v1265_v60 = vld [vmem:[#allocation20] ss:$0 sm:$0xff] }
 0x6f4   :  { %v964_v63 = vmul.f32 %v1259_v59, %v955_v61 }
 0x6f5   :  { %v963_v1 = vmul.f32 %v1259_v59, %v954_v62 }
 0x6f6   :  { %v973_v4 = vadd.f32 %v1260_v0, %v964_v63 }
 0x6f7   :  { %v972_v3 = vadd.f32 %v1260_v0, %v963_v1  ;;  %v1266_v0 = vld [vmem:[#allocation22] ss:$0 sm:$0xff] }
 0x6f9   :  { %1380 = vmatprep.mubr.msk.f32.mxu1 %vm221_vm0, %v972_v3 }
 0x6fa   :  { %1381 = vmatmul.mubr.msk.f32.vlgmr.msra.gmra.mrb[10].mxu1 %vm221_vm0, %v973_v4 }
 0x7cd   :  { %v1382_v22 = vpop.f32.mrb[10].mxu1 }
 0x7ce   :  { %v1063_v23 = vadd.f32 %v1382_v22, %v1261_v21  ;;  %v1057_v24 = vpop.f32.mrb[11].mxu1 }
 0x7cf   :  { %v1058_v25 = vadd.f32 %v1261_v21, %v1057_v24 }
 0x7d0   :  { %v1069_v26 = vmul.f32 0.70710677, %v1063_v23  ;;  %v1067_v33 = vmul.f32 0.5, %v1063_v23 }
 0x7d1   :  { %v1068_v27 = vmul.f32 0.70710677, %v1058_v25  ;;  %v1066_v31 = vmul.f32 0.5, %v1058_v25 }
 0x7d2   :  { %1521 = verf.f32 %v1069_v26 }
 0x7d3   :  { %1523 = verf.f32 %v1068_v27 }
 0x7dc   :  { %v1522_v28 = vpop.eup %1521 }
 0x7dd   :  { %v1524_v29 = vpop.eup %1523  ;;  %v1073_v30 = vadd.f32 1.0, %v1522_v28 }
 0x7de   :  { %v1072_v32 = vadd.f32 1.0, %v1524_v29 }
 0x7df   :  { %v1075_v35 = vmul.f32 %v1073_v30, %v1067_v33 }
 0x7e0   :  { %v1074_v34 = vmul.f32 %v1072_v32, %v1066_v31 }
 0x7e2   :  { %1415 = vmatprep.mubr.f32.mxu0 %v1074_v34 }
 0x7e3   :  { %1416 = vmatmul.mubr.f32.vlgmr.msra.gmra.mrb[4].mxu0 %v1075_v35 }
 0x8b6   :  { %v1417_v37 = vpop.f32.mrb[4].mxu0 }
 0x8b7   :  { %v1171_v6 = vadd.f32 %v1417_v37, %v1264_v36  ;;  %v1165_v2 = vpop.f32.mrb[5].mxu0 }
 0x8b8   :  { %v1166_v38 = vadd.f32 %v1264_v36, %v1165_v2 }
 0x8b9   :  { %v1175_v39 = vadd.f32 %v1171_v6, %v973_v4 }
 0x8ba   :  { %v1174_v40 = vadd.f32 %v1166_v38, %v972_v3 }
 0x8bb   :  { %v1179_v41 = vsel %vm221_vm0, %v1175_v39, 0.0 }
 0x8bc   :  { %1180 = vadd.xlane.f32.xlu1 %v1179_v41  ;;  %v1176_v42 = vsel %vm221_vm0, %v1174_v40, 0.0 }
 0x8bd   :  { %1177 = vadd.xlane.f32.xlu0 %v1176_v42 }
 0x949   :  { %v1181_v43 = vpop.xlane.xlu1 %1180 }
 0x94a   :  { %v1183_v44 = vmul.f32 0.03125, %v1181_v43  ;;  %v1178_v45 = vpop.xlane.xlu0 %1177 }
 0x94b   :  { %v1182_v46 = vmul.f32 0.03125, %v1178_v45 }
 0x94c   :  { %v1185_v47 = vsub.f32 %v1175_v39, %v1183_v44 }
 0x94d   :  { %v1184_v48 = vsub.f32 %v1174_v40, %v1182_v46 }
 0x94e   :  { %v1187_v49 = vmul.f32 %v1185_v47, %v1185_v47 }
 0x94f   :  { %v1186_v50 = vmul.f32 %v1184_v48, %v1184_v48 }
 0x950   :  { %v1191_v51 = vsel %vm221_vm0, %v1187_v49, 0.0 }
 0x951   :  { %1192 = vadd.xlane.f32.xlu1 %v1191_v51  ;;  %v1188_v52 = vsel %vm221_vm0, %v1186_v50, 0.0 }
 0x952   :  { %1189 = vadd.xlane.f32.xlu0 %v1188_v52 }
 0x9de   :  { %v1193_v53 = vpop.xlane.xlu1 %1192 }
 0x9df   :  { %v1195_v54 = vmul.f32 0.03125, %v1193_v53  ;;  %v1190_v55 = vpop.xlane.xlu0 %1189 }
 0x9e0   :  { %v1194_v56 = vmul.f32 0.03125, %v1190_v55 }
 0x9e1   :  { %v1197_v57 = vadd.f32 1e-05, %v1195_v54 }
 0x9e2   :  { %v1196_v58 = vadd.f32 1e-05, %v1194_v56 }
 0x9e3   :  { %1525 = vrsqrt.f32 %v1197_v57 }
 0x9e4   :  { %1527 = vrsqrt.f32 %v1196_v58 }
 0x9ed   :  { %v1526_v59 = vpop.eup %1525 }
 0x9ee   :  { %v1528_v61 = vpop.eup %1527  ;;  %v1201_v62 = vmul.f32 %v1526_v59, %v1185_v47 }
 0x9ef   :  { %v1200_v63 = vmul.f32 %v1528_v61, %v1184_v48 }
 0x9f0   :  { %v1210_v1 = vmul.f32 %v1265_v60, %v1201_v62 }
 0x9f1   :  { %v1209_v3 = vmul.f32 %v1265_v60, %v1200_v63 }
 0x9f2   :  { %v1219_v4 = vadd.f32 %v1266_v0, %v1210_v1 }
 0x9f3   :  { %v1218_v5 = vadd.f32 %v1266_v0, %v1209_v3 }
 0x9f4   :  { %1221 = vst.msk [vmem:[#allocation23 + $0x8] sm:$0xff] %vm221_vm0, %v1219_v4 }
 0x9f5   :  { %1220 = vst.msk [vmem:[#allocation23] sm:$0xff] %vm221_vm0, %v1218_v5 }
 0x9f6   :  { %1826 = shalt.err (!%p1823_p10)
}
 0x9f7   :  { %s1827_s15 = scalar_lea.hbm %s2200_s13, 256 }
 0x9f8   :  { %p1828_p11 = scmp.ne.s32.totalorder %s2200_s13, %s1827_s15  ;;  %p1831_p12 = scmp.lt.u32.totalorder %s1827_s15, %s2200_s13 }
 0x9fa   :  { %p1833_p13 = pnand %p1831_p12, %p1828_p11 }
 0x9fc   :  { %1836 = shalt.err (!%p1833_p13)
}
 0x9fd   :  { %1233 = dma.vmem_to_hbm [thread:$0]  %s1228_s23, 256, %s2200_s13, [#allocation4], %s1855_s20, %s1855_s20, %s1856_s21  }
 0x9fe   :  { %1851 = dma.done.wait [#allocation4], 256  }
 0x9ff   :  { %1852 = vsyncadd [#allocation4], 4294967040 }
 0xa00   :  { %1237 = vsyncpa [#allocation3], 1 }
 0xa01   :  { %1238 = vsyncpa [#allocation6], 1 }
 0xa02   :  { %1239 = vsyncpa [#allocation9], 1 }
 0xa03   :  { %1240 = vsyncpa [#allocation12], 1 }
 0xa04   :  { %1241 = vsyncpa [#allocation15], 1 }
 0xa05   :  { %1242 = vsyncpa [#allocation18], 1 }
 0xa06   :  { %1243 = vsyncpa [#allocation21], 1 }
 0xa07   :  { %1244 = vsyncpa [#allocation4], 1 }

</bundles_post_ra>
